<compile_context>
chip_gen: v6e
topology: v6e:2x2x1
jax: 0.10.0
libtpu: 0.0.40
codegen_flags: <defaults>
</compile_context>

<pallas_src>
import jax
import jax.numpy as jnp
from jax.experimental import pallas as pl
from jax.experimental.pallas import tpu as pltpu


def _round_up(n, m):
    return ((n + m - 1) // m) * m


def _make_mlp_kernel(n_layers):
    """Feature-major MLP kernel; batch on the lane axis.

    Ref order: (x, y, z, w0, b0, w1, b1, ..., w_{L-1}, b_{L-1}, out)
      x/y/z : (1, TB)            row slices of the batch
      w_i   : (d_out_i, d_in_i)  torch layout
      b_i   : (d_out_i, 1)
      out   : (out_dim, TB)
    Sigmoid after every layer except the last (ln_out).
    """

    def _sigmoid(v):
        # one EUP op (tanh) instead of exp + reciprocal
        return 0.5 * (jnp.tanh(0.5 * v) + 1.0)

    def kernel(*refs):
        x_ref, y_ref, z_ref = refs[0], refs[1], refs[2]
        out_ref = refs[-1]
        wb = refs[3:-1]

        # First layer (K=3): VPU broadcast multiply-adds, no MXU pass.
        w0 = wb[0][...]                      # (h0, 3)
        b0 = wb[1][...]                      # (h0, 1)
        h = (w0[:, 0:1] * x_ref[...]
             + w0[:, 1:2] * y_ref[...]
             + w0[:, 2:3] * z_ref[...]
             + b0)                           # (h0, TB)
        h = _sigmoid(h)

        # Remaining layers: lane-dense MXU matmuls W @ h.
        for li in range(1, n_layers):
            w = wb[2 * li][...]              # (d_out, d_in)
            b = wb[2 * li + 1][...]          # (d_out, 1)
            h = jnp.dot(w, h, preferred_element_type=jnp.float32) + b
            if li < n_layers - 1:            # no activation on ln_out
                h = _sigmoid(h)

        out_ref[...] = h.astype(out_ref.dtype)

    return kernel


def dcsnn_forward(x, y, z, params, *, batch_tile=512):
    """params: list of (W, b) with W: (d_out, d_in) [torch layout], b: (d_out,)."""
    n = x.shape[0]
    n_layers = len(params)
    out_dim = params[-1][0].shape[0]

    # Batch tile: multiple of 128 lanes, capped by the (padded) batch size.
    tb = min(batch_tile, _round_up(n, 128))
    n_pad = _round_up(n, tb)
    grid = (n_pad // tb,)

    def _row(v):
        r = v.reshape(1, n).astype(jnp.float32)
        if n_pad != n:
            r = jnp.pad(r, ((0, 0), (0, n_pad - n)))
        return r

    rows = [_row(x), _row(y), _row(z)]        # each (1, n_pad)

    flat_args = []
    for w, b in params:
        flat_args.append(w.astype(jnp.float32))            # (d_out, d_in)
        flat_args.append(b.reshape(-1, 1).astype(jnp.float32))  # (d_out, 1)

    # x/y/z rows stream per batch tile; weights/biases are full-array blocks
    # with a constant index_map (VMEM-resident across all grid steps).
    in_specs = [pl.BlockSpec((1, tb), lambda i: (0, i)) for _ in range(3)]
    for arr in flat_args:
        in_specs.append(pl.BlockSpec(arr.shape, lambda i: (0, 0)))
    out_spec = pl.BlockSpec((out_dim, tb), lambda i: (0, i))

    kernel = _make_mlp_kernel(n_layers)

    out_t = pl.pallas_call(
        kernel,
        out_shape=jax.ShapeDtypeStruct((out_dim, n_pad), jnp.float32),
        grid=grid,
        in_specs=in_specs,
        out_specs=out_spec,
        compiler_params=pltpu.CompilerParams(
            dimension_semantics=("parallel",)
        ),
    )(*rows, *flat_args)

    # back to (N, out_dim), dropping lane padding
    return out_t[:, :n].T


def _init_params(key, dims):
    """Deterministic torch-style init: U(-1/sqrt(fan_in), 1/sqrt(fan_in)), torch layout."""
    params = []
    keys = jax.random.split(key, 2 * (len(dims) - 1))
    ki = 0
    for d_in, d_out in zip(dims[:-1], dims[1:]):
        bound = 1.0 / float(d_in) ** 0.5
        w = jax.random.uniform(keys[ki], (d_out, d_in), jnp.float32, -bound, bound)
        ki += 1
        b = jax.random.uniform(keys[ki], (d_out,), jnp.float32, -bound, bound)
        ki += 1
        params.append((w, b))
    return params


if __name__ == "__main__":
    key = jax.random.PRNGKey(0)
    k_x, k_y, k_z, k_p = jax.random.split(key, 4)

    # Model(in_dim=3, h_dim=[32, 32], out_dim=1); x, y, z are (N, 1) columns.
    # N chosen non-multiple of the tile to exercise padding + 2 grid steps.
    N = 1000
    in_dim, h_dim, out_dim = 3, [32, 32], 1

    x = jax.random.normal(k_x, (N, 1), jnp.float32)
    y = jax.random.normal(k_y, (N, 1), jnp.float32)
    z = jax.random.normal(k_z, (N, 1), jnp.float32)

    params = _init_params(k_p, [in_dim] + h_dim + [out_dim])

    out = dcsnn_forward(x, y, z, params)
    jax.block_until_ready(out)

    # Pure-JAX reference of the same math (torch-layout weights: x @ W.T + b).
    ref = jnp.concatenate([x, y, z], axis=1)
    for i, (w, b) in enumerate(params):
        ref = ref @ w.T + b
        if i < len(params) - 1:
            ref = jax.nn.sigmoid(ref)

    assert out.shape == (N, out_dim)
    assert jnp.allclose(out, ref, atol=1e-5), "mismatch vs reference"

    print("KERNEL_OK")
</pallas_src>

<mosaic_0001>
module attributes {stable_mosaic.version = 11 : i64} {
  func.func @kernel(%arg0: i32, %arg1: memref<1x512xf32, #tpu.memory_space<vmem>>, %arg2: memref<1x512xf32, #tpu.memory_space<vmem>>, %arg3: memref<1x512xf32, #tpu.memory_space<vmem>>, %arg4: memref<32x3xf32, #tpu.memory_space<vmem>>, %arg5: memref<32x1xf32, #tpu.memory_space<vmem>>, %arg6: memref<32x32xf32, #tpu.memory_space<vmem>>, %arg7: memref<32x1xf32, #tpu.memory_space<vmem>>, %arg8: memref<1x32xf32, #tpu.memory_space<vmem>>, %arg9: memref<1x1xf32, #tpu.memory_space<vmem>>, %arg10: memref<1x512xf32, #tpu.memory_space<vmem>>) attributes {dimension_semantics = [#tpu.dimension_semantics<parallel>], iteration_bounds = array<i64: 2>, scalar_prefetch = 0 : i64, scratch_operands = 0 : i64, tpu.core_type = #tpu.core_type<tc>, window_params = [{transform_indices = @transform_0, window_bounds = array<i64: 1, 512>}, {transform_indices = @transform_1, window_bounds = array<i64: 1, 512>}, {transform_indices = @transform_2, window_bounds = array<i64: 1, 512>}, {pipeline_mode = #tpu.pipeline_mode<synchronous>, transform_indices = @transform_3, window_bounds = array<i64: 32, 3>}, {pipeline_mode = #tpu.pipeline_mode<synchronous>, transform_indices = @transform_4, window_bounds = array<i64: 32, 1>}, {pipeline_mode = #tpu.pipeline_mode<synchronous>, transform_indices = @transform_5, window_bounds = array<i64: 32, 32>}, {pipeline_mode = #tpu.pipeline_mode<synchronous>, transform_indices = @transform_6, window_bounds = array<i64: 32, 1>}, {pipeline_mode = #tpu.pipeline_mode<synchronous>, transform_indices = @transform_7, window_bounds = array<i64: 1, 32>}, {pipeline_mode = #tpu.pipeline_mode<synchronous>, transform_indices = @transform_8, window_bounds = array<i64: 1, 1>}, {transform_indices = @transform_9, window_bounds = array<i64: 1, 512>}]} {
    %c0 = arith.constant 0 : index
    %c0_0 = arith.constant 0 : index
    %0 = vector.load %arg4[%c0, %c0_0] : memref<32x3xf32, #tpu.memory_space<vmem>>, vector<32x3xf32>
    %c0_1 = arith.constant 0 : index
    %c0_2 = arith.constant 0 : index
    %1 = vector.load %arg5[%c0_1, %c0_2] : memref<32x1xf32, #tpu.memory_space<vmem>>, vector<32x1xf32>
    %2 = vector.extract_strided_slice %0 {offsets = [0, 0], sizes = [32, 1], strides = [1, 1]} : vector<32x3xf32> to vector<32x1xf32>
    %c0_3 = arith.constant 0 : index
    %c0_4 = arith.constant 0 : index
    %3 = vector.load %arg1[%c0_3, %c0_4] : memref<1x512xf32, #tpu.memory_space<vmem>>, vector<1x512xf32>
    %4 = vector.broadcast %2 : vector<32x1xf32> to vector<32x512xf32>
    %5 = vector.broadcast %3 : vector<1x512xf32> to vector<32x512xf32>
    %6 = arith.mulf %4, %5 : vector<32x512xf32>
    %7 = vector.extract_strided_slice %0 {offsets = [0, 1], sizes = [32, 1], strides = [1, 1]} : vector<32x3xf32> to vector<32x1xf32>
    %c0_5 = arith.constant 0 : index
    %c0_6 = arith.constant 0 : index
    %8 = vector.load %arg2[%c0_5, %c0_6] : memref<1x512xf32, #tpu.memory_space<vmem>>, vector<1x512xf32>
    %9 = vector.broadcast %7 : vector<32x1xf32> to vector<32x512xf32>
    %10 = vector.broadcast %8 : vector<1x512xf32> to vector<32x512xf32>
    %11 = arith.mulf %9, %10 : vector<32x512xf32>
    %12 = arith.addf %6, %11 : vector<32x512xf32>
    %13 = vector.extract_strided_slice %0 {offsets = [0, 2], sizes = [32, 1], strides = [1, 1]} : vector<32x3xf32> to vector<32x1xf32>
    %c0_7 = arith.constant 0 : index
    %c0_8 = arith.constant 0 : index
    %14 = vector.load %arg3[%c0_7, %c0_8] : memref<1x512xf32, #tpu.memory_space<vmem>>, vector<1x512xf32>
    %15 = vector.broadcast %13 : vector<32x1xf32> to vector<32x512xf32>
    %16 = vector.broadcast %14 : vector<1x512xf32> to vector<32x512xf32>
    %17 = arith.mulf %15, %16 : vector<32x512xf32>
    %18 = arith.addf %12, %17 : vector<32x512xf32>
    %19 = vector.broadcast %1 : vector<32x1xf32> to vector<32x512xf32>
    %20 = arith.addf %18, %19 : vector<32x512xf32>
    %cst = arith.constant 5.000000e-01 : f32
    %21 = vector.broadcast %cst : f32 to vector<32x512xf32>
    %22 = arith.mulf %21, %20 : vector<32x512xf32>
    %23 = math.tanh %22 : vector<32x512xf32>
    %cst_9 = arith.constant 1.000000e+00 : f32
    %24 = vector.broadcast %cst_9 : f32 to vector<32x512xf32>
    %25 = arith.addf %23, %24 : vector<32x512xf32>
    %cst_10 = arith.constant 5.000000e-01 : f32
    %26 = vector.broadcast %cst_10 : f32 to vector<32x512xf32>
    %27 = arith.mulf %26, %25 : vector<32x512xf32>
    %c0_11 = arith.constant 0 : index
    %c0_12 = arith.constant 0 : index
    %28 = vector.load %arg6[%c0_11, %c0_12] : memref<32x32xf32, #tpu.memory_space<vmem>>, vector<32x32xf32>
    %c0_13 = arith.constant 0 : index
    %c0_14 = arith.constant 0 : index
    %29 = vector.load %arg7[%c0_13, %c0_14] : memref<32x1xf32, #tpu.memory_space<vmem>>, vector<32x1xf32>
    %cst_15 = arith.constant dense<0.000000e+00> : vector<32x512xf32>
    %30 = tpu.matmul %28, %27, %cst_15 {dimension_numbers = #tpu.dot_dimension_numbers<[1], [0], [0], [1], [0, 0, 1, 1], [], []>} : vector<32x32xf32>, vector<32x512xf32>, vector<32x512xf32> -> vector<32x512xf32>
    %31 = vector.broadcast %29 : vector<32x1xf32> to vector<32x512xf32>
    %32 = arith.addf %30, %31 : vector<32x512xf32>
    %cst_16 = arith.constant 5.000000e-01 : f32
    %33 = vector.broadcast %cst_16 : f32 to vector<32x512xf32>
    %34 = arith.mulf %33, %32 : vector<32x512xf32>
    %35 = math.tanh %34 : vector<32x512xf32>
    %cst_17 = arith.constant 1.000000e+00 : f32
    %36 = vector.broadcast %cst_17 : f32 to vector<32x512xf32>
    %37 = arith.addf %35, %36 : vector<32x512xf32>
    %cst_18 = arith.constant 5.000000e-01 : f32
    %38 = vector.broadcast %cst_18 : f32 to vector<32x512xf32>
    %39 = arith.mulf %38, %37 : vector<32x512xf32>
    %c0_19 = arith.constant 0 : index
    %c0_20 = arith.constant 0 : index
    %40 = vector.load %arg8[%c0_19, %c0_20] : memref<1x32xf32, #tpu.memory_space<vmem>>, vector<1x32xf32>
    %c0_21 = arith.constant 0 : index
    %c0_22 = arith.constant 0 : index
    %41 = vector.load %arg9[%c0_21, %c0_22] : memref<1x1xf32, #tpu.memory_space<vmem>>, vector<1x1xf32>
    %cst_23 = arith.constant dense<0.000000e+00> : vector<1x512xf32>
    %42 = tpu.matmul %40, %39, %cst_23 {dimension_numbers = #tpu.dot_dimension_numbers<[1], [0], [0], [1], [0, 0, 1, 1], [], []>} : vector<1x32xf32>, vector<32x512xf32>, vector<1x512xf32> -> vector<1x512xf32>
    %43 = vector.broadcast %41 : vector<1x1xf32> to vector<1x512xf32>
    %44 = arith.addf %42, %43 : vector<1x512xf32>
    %c0_24 = arith.constant 0 : index
    %c0_25 = arith.constant 0 : index
    %45 = vector.load %arg10[%c0_24, %c0_25] : memref<1x512xf32, #tpu.memory_space<vmem>>, vector<1x512xf32>
    tpu.vector_store %arg10[%c0_24, %c0_25], %44 {strides = array<i32>} : memref<1x512xf32, #tpu.memory_space<vmem>>, vector<1x512xf32>,
    return
  }
  func.func @transform_0(%arg0: i32) -> (i32, i32) {
    %c0_i32 = arith.constant 0 : i32
    %c0_i32_0 = arith.constant 0 : i32
    return %c0_i32, %arg0 : i32, i32
  }
  func.func @transform_1(%arg0: i32) -> (i32, i32) {
    %c0_i32 = arith.constant 0 : i32
    %c0_i32_0 = arith.constant 0 : i32
    return %c0_i32, %arg0 : i32, i32
  }
  func.func @transform_2(%arg0: i32) -> (i32, i32) {
    %c0_i32 = arith.constant 0 : i32
    %c0_i32_0 = arith.constant 0 : i32
    return %c0_i32, %arg0 : i32, i32
  }
  func.func @transform_3(%arg0: i32) -> (i32, i32) {
    %c0_i32 = arith.constant 0 : i32
    %c0_i32_0 = arith.constant 0 : i32
    %c0_i32_1 = arith.constant 0 : i32
    return %c0_i32, %c0_i32_0 : i32, i32
  }
  func.func @transform_4(%arg0: i32) -> (i32, i32) {
    %c0_i32 = arith.constant 0 : i32
    %c0_i32_0 = arith.constant 0 : i32
    %c0_i32_1 = arith.constant 0 : i32
    return %c0_i32, %c0_i32_0 : i32, i32
  }
  func.func @transform_5(%arg0: i32) -> (i32, i32) {
    %c0_i32 = arith.constant 0 : i32
    %c0_i32_0 = arith.constant 0 : i32
    %c0_i32_1 = arith.constant 0 : i32
    return %c0_i32, %c0_i32_0 : i32, i32
  }
  func.func @transform_6(%arg0: i32) -> (i32, i32) {
    %c0_i32 = arith.constant 0 : i32
    %c0_i32_0 = arith.constant 0 : i32
    %c0_i32_1 = arith.constant 0 : i32
    return %c0_i32, %c0_i32_0 : i32, i32
  }
  func.func @transform_7(%arg0: i32) -> (i32, i32) {
    %c0_i32 = arith.constant 0 : i32
    %c0_i32_0 = arith.constant 0 : i32
    %c0_i32_1 = arith.constant 0 : i32
    return %c0_i32, %c0_i32_0 : i32, i32
  }
  func.func @transform_8(%arg0: i32) -> (i32, i32) {
    %c0_i32 = arith.constant 0 : i32
    %c0_i32_0 = arith.constant 0 : i32
    %c0_i32_1 = arith.constant 0 : i32
    return %c0_i32, %c0_i32_0 : i32, i32
  }
  func.func @transform_9(%arg0: i32) -> (i32, i32) {
    %c0_i32 = arith.constant 0 : i32
    %c0_i32_0 = arith.constant 0 : i32
    return %c0_i32, %arg0 : i32, i32
  }
}

</mosaic_0001>

<bundles_post_ra>
// kernel: tpu_custom_call.1
= control target key start
LH: loop header
LB: loop body
LE: loop exit
PB: predicated region body
PF: predicated region fallthrough
CT: control target
= control target key end

     0   :  { %s1778_s0 = inlined_call_operand.vmem [shape: f32[1,1024], index: 0, kind: input, shape index: {}]   ;;  %s1779_s1 = inlined_call_operand.vmem [shape: f32[1,1024], index: 1, kind: input, shape index: {}]   ;;  %s1780_s2 = inlined_call_operand.vmem [shape: f32[1,1024], index: 2, kind: input, shape index: {}]   ;;  %s1781_s3 = inlined_call_operand.vmem [shape: f32[32,3], index: 3, kind: input, shape index: {}]   ;;  %s1782_s4 = inlined_call_operand.vmem [shape: f32[32,1], index: 4, kind: input, shape index: {}]   ;;  %s1783_s5 = inlined_call_operand.vmem [shape: f32[32,32], index: 5, kind: input, shape index: {}]   ;;  %s1784_s6 = inlined_call_operand.vmem [shape: f32[32,1], index: 6, kind: input, shape index: {}]   ;;  %s1785_s7 = inlined_call_operand.vmem [shape: f32[1,32], index: 7, kind: input, shape index: {}]   ;;  %s1786_s8 = inlined_call_operand.<no memory space> [shape: f32[1,1], index: 8, kind: input, shape index: {}]   ;;  %s1787_s9 = inlined_call_operand.hbm [shape: f32[1,1024], index: 9, kind: output, shape index: {}]  }
   0x1   :  { %v14_v0 = vstv %s1786_s8 }
   0x2   :  { %15 = vst [vmem:[#allocation2] sm:$0x1] %v14_v0 }
   0x3   :  { %16 = vsyncpa [#allocation4], 0 }
   0x4   :  { %18 = vsyncpa [#allocation4 + $0x1], 0  ;;  %s1504_s11 = smov 0   ;;  %s1506_s12 = smov 0  }
   0x5   :  { %s1508_s13 = smov 0   ;;  %s1510_s14 = smov 0  }
   0x6 LB: > { %s1525_s8 = sadd.s32 4294967295, %s1443_s14   ;;  %s1239_s15 = sadd.s32 4294967294, %s1443_s14   ;;  %s1443_s14 = sphi %s1510_s14, %s1793_s14   ;;  %s1439_s13 = sphi %s1508_s13, %s1792_s13   ;;  %s1435_s12 = sphi %s1506_s12, %s1791_s12   ;;  %s1431_s11 = sphi %s1504_s11, %s1790_s11  }
   0x7   : > { %s1529_s16 = sadd.s32 1, %s1443_s14   ;;  %s235_s17 = sadd.s32 1, %s1439_s13 }
   0x8   : > { %s232_s18 = ssub.s32 %s1443_s14, %s1529_s16  ;;  %p245_p0 = scmp.ne.s32.totalorder %s1439_s13, %s1435_s12 }
   0x9   : > { %p233_p1 = scmp.eq.s32.totalorder %s232_s18, 0  ;;  %p246_p2 = scmp.eq.s32.totalorder %s1525_s8, 1 }
   0xa   : > { %p251_p3 = scmp.ne.s32.totalorder %s1435_s12, %s1431_s11  ;;  %p252_p4 = scmp.eq.s32.totalorder %s1239_s15, 1 }
   0xb   : > { %s1540_s19 = scalar_select %p233_p1, %s1439_s13, %s235_s17  }
   0xc   : > { %p1542_p5 = por %p246_p2, %p245_p0  ;;  %p1546_p6 = por %p252_p4, %p251_p3 }
   0xd   : > { %p1242_p7 = scmp.ge.s32.totalorder %s1443_s14, 1  ;;  %p312_p8 = scmp.lt.s32.totalorder %s1443_s14, 3 }
   0xf   : > { %p313_p9 = pnand %p1242_p7, %p312_p8 }
  0x10   : > { %s1244_s17 = sshll.u32 (!%p313_p9), %s1525_s8, 2  ;;  %s352_s27 = sand.u32 (!%p313_p9), 1, %s1435_s12  }
  0x11   : > { %316 = sbr.rel (%p313_p9) target bundleno = 674 (0x2a2), region = 56  ;;  %p356_p10 = scmp.lt.s32.totalorder (!%p313_p9), %s1244_s17, 7 }
  0x12   : > { %s1243_s28 = sshll.u32 (!%p313_p9), %s352_s27, 2  ;;  %s1151_s22 = scalar_lea.sflag (!%p313_p9), [#allocation4], %s352_s27 }
  0x13   : > { %s354_s30 = scalar_lea.vmem (!%p313_p9), [#allocation3], %s1243_s28  ;;  %s1450_s24 = smov (!%p313_p9), [#allocation3]  }
  0x14   : > { %s1165_s10 = sshll.u32 (!%p313_p9), %s354_s30, 4  ;;  %s1166_s10 = int_to_ptr.vmem [resolvable:$true] %s1165_s10 }
  0x16   : > { %v374_v1 = vld [vmem:[%s1781_s3 + $0x18] sm:$0xff]  ;;  %v373_v2 = vld [vmem:[%s1781_s3 + $0x10] sm:$0xff]  ;;  %v1445_v3 = vmov 1   ;;  %v1446_v4 = vmov 0   ;;  %v372_v5 = vld [vmem:[%s1781_s3 + $0x8] sm:$0xff]  ;;  %v1447_v6 = vmov 2   ;;  %v401_v18 = vlaneseq }
  0x17   : > { %1307 = vset.pattern.permute.xlu0 %v1445_v3  ;;  %1308 = vset.pattern.permute.xlu1 %v1446_v4  ;;  %v371_v7 = vld [vmem:[%s1781_s3] sm:$0xff]  ;;  %v377_v8 = vld [vmem:[%s1782_s4 + $0x10] sm:$0xff]  ;;  %v684_v9 = vld [vmem:[%s1784_s6 + $0x18] sm:$0xff]  ;;  %v1448_v17 = vmov 0.0   ;;  %s1795_s17 = smov (!%p356_p10, %s1244_s17), 7  ;;  %vm705_vm0 = vcmask 261120  }
  0x18   : > { %451 = vperm.xlu0 %1307, %v374_v1   ;;  %392 = vperm.xlu1 %1308, %v373_v2   ;;  %v682_v10 = vld [vmem:[%s1784_s6 + $0x8] sm:$0xff]  ;;  %v378_v11 = vld [vmem:[%s1782_s4 + $0x18] sm:$0xff]  ;;  %v961_v12 = vld [vmem:[#allocation2] sm:$0x1]  ;;  %v1592_v21 = vshrl.u32 %v401_v18, 7  ;;  %s363_s23 = scalar_lea.vmem %s1779_s1, %s1795_s17  ;;  %s358_s26 = scalar_lea.vmem %s1778_s0, %s1795_s17  ;;  %vm1147_vm1 = vcmp.lt.s32.totalorder %v401_v18, 512 }
  0x19   : > { %v376_v13 = vld [vmem:[%s1782_s4 + $0x8] sm:$0xff]  ;;  %v375_v14 = vld [vmem:[%s1782_s4] sm:$0xff]  ;;  %v683_v15 = vld [vmem:[%s1784_s6 + $0x10] sm:$0xff]  ;;  %782 = vmatprep.mubr.f32.mxu0 %v1448_v17  ;;  %871 = vmatprep.mubr.f32.mxu1 %v1448_v17  ;;  %s368_s29 = scalar_lea.vmem %s1780_s2, %s1795_s17 }
  0x1a   : > { %v681_v16 = vld [vmem:[%s1784_s6] sm:$0xff]  ;;  %v1601_v24 = vsub.s32 0, %v1592_v21  ;;  %v407_v26 = vsub.s32 1, %v1592_v21  ;;  %v411_v27 = vsub.s32 2, %v1592_v21  ;;  %v415_v28 = vsub.s32 3, %v1592_v21 }
  0x1b   : > { %v437_v25 = vld [vmem:[%s363_s23] sm:$0xf]  ;;  %s1383_s23 = scalar_lea.vmem %s1166_s10, 64 }
  0x1c   : > { %1314 = vset.pattern.permute.xlu0 %v1447_v6  ;;  %1309 = vset.pattern.permute.xlu1 %v1445_v3  ;;  %v379_v29 = vld [vmem:[%s358_s26] sm:$0xf]  ;;  %v1612_v32 = vrot.slane %v437_v25, %v1601_v24  ;;  %v1617_v34 = vrot.slane %v437_v25, %v407_v26  ;;  %v1625_v39 = vrot.slane %v437_v25, %v415_v28  ;;  %p1384_p11 = scmp.ne.s32.totalorder %s1166_s10, %s1383_s23 }
  0x1d   : > { %447 = vperm.xlu1 %1309, %v373_v2   ;;  %513 = vperm.xlu0 %1314, %v372_v5   ;;  %v1615_v33 = vrot.slane %v379_v29, %v1601_v24  ;;  %v507_v35 = vld [vmem:[%s368_s29] sm:$0xf]  ;;  %v1619_v36 = vrot.slane %v379_v29, %v407_v26  ;;  %v1621_v37 = vrot.slane %v379_v29, %v411_v27  ;;  %s1262_s29 = sshll.u32 %s1525_s8, 6  ;;  %s1387_s8 = sshll.u32 %s1450_s24, 4  ;;  %s1388_s8 = int_to_ptr.vmem [resolvable:$false] %s1387_s8 }
  0x1e   : > { %v1623_v38 = vrot.slane %v379_v29, %v415_v28  ;;  %v1627_v41 = vrot.slane %v437_v25, %v411_v27  ;;  %v1631_v43 = vrot.slane %v507_v35, %v1601_v24  ;;  %v1633_v44 = vrot.slane %v507_v35, %v407_v26  ;;  %s1163_s18 = scalar_lea.hbm %s1787_s9, %s1262_s29  ;;  %p1385_p12 = pnand %p1384_p11, %p1542_p5 }
  0x1f   : > { %v1637_v48 = vrot.slane %v507_v35, %v411_v27  ;;  %v1639_v49 = vrot.slane %v507_v35, %v415_v28  ;;  %s1389_s25 = scalar_lea.vmem %s1388_s8, 128  ;;  %p1390_p0 = scmp.lt.s32.totalorder %s1166_s10, %s1388_s8 }
  0x20   : > { %p1386_p13 = pneg %p1385_p12  ;;  %p1391_p1 = scmp.lt.s32.totalorder %s1389_s25, %s1383_s23 }
  0x21   : > { %1310 = vset.pattern.permute.xlu1 %v1447_v6  ;;  %1315 = vset.pattern.permute.xlu0 %v1446_v4 }
  0x22   : > { %521 = vperm.xlu1 %1310, %v374_v1   ;;  %397 = vperm.xlu0 %1315, %v374_v1   ;;  %p1392_p2 = por %p1391_p1, %p1390_p0 }
  0x24   : > { %p1393_p3 = pnand %p1392_p2, %p1386_p13 }
  0x26   : > { %1311 = vset.pattern.permute.xlu1 %v1445_v3  ;;  %387 = vperm.xlu0 %1315, %v372_v5  }
  0x27   : > { %443 = vperm.xlu1 %1311, %v372_v5  }
  0x2a   : > { %382 = vperm.xlu0 %1315, %v371_v7  }
  0x2b   : > { %1312 = vset.pattern.permute.xlu1 %v1447_v6 }
  0x2c   : > { %517 = vperm.xlu1 %1312, %v373_v2  }
  0x2e   : > { %589 = vperm.xlu0 %1315, %v377_v8  }
  0x30   : > { %1313 = vset.pattern.permute.xlu1 %v1445_v3 }
  0x31   : > { %439 = vperm.xlu1 %1313, %v371_v7  }
  0x32   : > { %702 = vperm.xlu0 %1315, %v684_v9  }
  0x35   : > { %1316 = vset.pattern.permute.xlu1 %v1446_v4 }
  0x36   : > { %692 = vperm.xlu0 %1315, %v682_v10   ;;  %594 = vperm.xlu1 %1316, %v378_v11  }
  0x3a   : > { %964 = vperm.xlu0 %1315, %v961_v12   ;;  %1317 = vset.pattern.permute.xlu1 %v1447_v6 }
  0x3b   : > { %509 = vperm.xlu1 %1317, %v371_v7  }
  0x3f   : > { %1318 = vset.pattern.permute.xlu1 %v1446_v4 }
  0x40   : > { %584 = vperm.xlu1 %1318, %v376_v13  }
  0x44   : > { %579 = vperm.xlu1 %1318, %v375_v14  }
  0x48   : > { %697 = vperm.xlu1 %1318, %v683_v15  }
  0x4c   : > { %687 = vperm.xlu1 %1318, %v681_v16  }
  0x93   : > { %v393_v19 = vpop.permute.xlu1 %392  ;;  %v452_v20 = vpop.permute.xlu0 %451 }
  0x94   : > { %v429_v46 = vmul.f32 %v1615_v33, %v393_v19  ;;  %v430_v50 = vmul.f32 %v1619_v36, %v393_v19  ;;  %v431_v51 = vmul.f32 %v1621_v37, %v393_v19  ;;  %v432_v52 = vmul.f32 %v1623_v38, %v393_v19 }
  0x95   : > { %v487_v53 = vmul.f32 %v1612_v32, %v452_v20  ;;  %v488_v54 = vmul.f32 %v1617_v34, %v452_v20  ;;  %v489_v55 = vmul.f32 %v1627_v41, %v452_v20  ;;  %v490_v56 = vmul.f32 %v1625_v39, %v452_v20 }
  0x98   : > { %v448_v22 = vpop.permute.xlu1 %447  ;;  %v514_v23 = vpop.permute.xlu0 %513 }
  0x99   : > { %v483_v42 = vmul.f32 %v1612_v32, %v448_v22  ;;  %v484_v47 = vmul.f32 %v1617_v34, %v448_v22  ;;  %v486_v57 = vmul.f32 %v1625_v39, %v448_v22  ;;  %v485_v59 = vmul.f32 %v1627_v41, %v448_v22 }
  0x9a   : > { %v1653_v61 = vmul.f32 %v1631_v43, %v514_v23  ;;  %v1656_v62 = vmul.f32 %v1633_v44, %v514_v23  ;;  %v1666_v9 = vmul.f32 %v1637_v48, %v514_v23  ;;  %v1669_v10 = vmul.f32 %v1639_v49, %v514_v23 }
  0x9b   : > { %v499_v60 = vadd.f32 %v483_v42, %v429_v46  ;;  %v500_v63 = vadd.f32 %v484_v47, %v430_v50  ;;  %v502_v8 = vadd.f32 %v486_v57, %v432_v52  ;;  %v501_v12 = vadd.f32 %v485_v59, %v431_v51 }
  0x9d   : > { %v1609_v30 = vpop.permute.xlu1 %521  ;;  %v398_v31 = vpop.permute.xlu0 %397 }
  0x9e   : > { %v433_v0 = vmul.f32 %v1615_v33, %v398_v31  ;;  %v434_v1 = vmul.f32 %v1619_v36, %v398_v31  ;;  %v435_v2 = vmul.f32 %v1621_v37, %v398_v31  ;;  %v436_v4 = vmul.f32 %v1623_v38, %v398_v31 }
  0x9f   : > { %v557_v13 = vmul.f32 %v1631_v43, %v1609_v30  ;;  %v558_v16 = vmul.f32 %v1633_v44, %v1609_v30  ;;  %v559_v19 = vmul.f32 %v1637_v48, %v1609_v30 }
  0xa0   : > { %v503_v20 = vadd.f32 %v487_v53, %v433_v0  ;;  %v504_v26 = vadd.f32 %v488_v54, %v434_v1  ;;  %v505_v23 = vadd.f32 %v489_v55, %v435_v2  ;;  %v506_v27 = vadd.f32 %v490_v56, %v436_v4 }
  0xa1   : > { %v388_v40 = vpop.permute.xlu0 %387  ;;  %v560_v53 = vmul.f32 %v1639_v49, %v1609_v30 }
  0xa2   : > { %v444_v45 = vpop.permute.xlu1 %443  ;;  %v425_v31 = vmul.f32 %v1615_v33, %v388_v40  ;;  %v426_v47 = vmul.f32 %v1619_v36, %v388_v40  ;;  %v427_v50 = vmul.f32 %v1621_v37, %v388_v40  ;;  %v428_v54 = vmul.f32 %v1623_v38, %v388_v40 }
  0xa3   : > { %v479_v35 = vmul.f32 %v1612_v32, %v444_v45  ;;  %v480_v51 = vmul.f32 %v1617_v34, %v444_v45  ;;  %v481_v52 = vmul.f32 %v1627_v41, %v444_v45  ;;  %v482_v55 = vmul.f32 %v1625_v39, %v444_v45 }
  0xa4   : > { %v573_v59 = vadd.f32 %v557_v13, %v503_v20  ;;  %v576_v4 = vadd.f32 %v560_v53, %v506_v27 }
  0xa5   : > { %v1649_v58 = vpop.permute.xlu0 %382  ;;  %v495_v0 = vadd.f32 %v479_v35, %v425_v31 }
  0xa6   : > { %v421_v45 = vmul.f32 %v1615_v33, %v1649_v58  ;;  %v422_v13 = vmul.f32 %v1619_v36, %v1649_v58  ;;  %v424_v20 = vmul.f32 %v1623_v38, %v1649_v58 }
  0xa7   : > { %v518_v3 = vpop.permute.xlu1 %517  ;;  %v565_v27 = vadd.f32 %v1653_v61, %v495_v0 }
  0xa8   : > { %v553_v5 = vmul.f32 %v1631_v43, %v518_v3  ;;  %v554_v6 = vmul.f32 %v1633_v44, %v518_v3  ;;  %v556_v7 = vmul.f32 %v1639_v49, %v518_v3  ;;  %v555_v11 = vmul.f32 %v1637_v48, %v518_v3 }
  0xa9   : > { %v590_v22 = vpop.permute.xlu0 %589 }
  0xaa   : > { %v569_v14 = vadd.f32 %v553_v5, %v499_v60  ;;  %v570_v15 = vadd.f32 %v554_v6, %v500_v63  ;;  %v572_v25 = vadd.f32 %v556_v7, %v502_v8  ;;  %v571_v42 = vadd.f32 %v555_v11, %v501_v12 }
  0xab   : > { %v575_v60 = vadd.f32 %v559_v19, %v505_v23  ;;  %v574_v63 = vadd.f32 %v558_v16, %v504_v26  ;;  %v496_v5 = vadd.f32 %v480_v51, %v426_v47  ;;  %v497_v6 = vadd.f32 %v481_v52, %v427_v50 }
  0xac   : > { %v605_v28 = vadd.f32 %v590_v22, %v569_v14  ;;  %v440_v29 = vpop.permute.xlu1 %439  ;;  %v606_v46 = vadd.f32 %v590_v22, %v570_v15  ;;  %v608_v56 = vadd.f32 %v590_v22, %v572_v25  ;;  %v607_v1 = vadd.f32 %v590_v22, %v571_v42 }
  0xad   : > { %v498_v11 = vadd.f32 %v482_v55, %v428_v54  ;;  %v423_v15 = vmul.f32 %v1621_v37, %v1649_v58  ;;  %v475_v22 = vmul.f32 %v1612_v32, %v440_v29  ;;  %v476_v33 = vmul.f32 %v1617_v34, %v440_v29 }
  0xae   : > { %v621_v57 = vmul.f32 0.5, %v605_v28  ;;  %v622_v2 = vmul.f32 0.5, %v606_v46  ;;  %v624_v30 = vmul.f32 0.5, %v608_v56  ;;  %v623_v16 = vmul.f32 0.5, %v607_v1 }
  0xaf   : > { %v477_v36 = vmul.f32 %v1627_v41, %v440_v29  ;;  %v566_v37 = vadd.f32 %v1656_v62, %v496_v5  ;;  %v567_v28 = vadd.f32 %v1666_v9, %v497_v6  ;;  %v478_v38 = vmul.f32 %v1625_v39, %v440_v29 }
  0xb0   : > { %1319 = vtanh.f32 %v621_v57  ;;  %v491_v31 = vadd.f32 %v475_v22, %v421_v45  ;;  %v568_v41 = vadd.f32 %v1669_v10, %v498_v11  ;;  %v492_v35 = vadd.f32 %v476_v33, %v422_v13 }
  0xb1   : > { %v595_v3 = vpop.permute.xlu1 %594  ;;  %1321 = vtanh.f32 %v622_v2  ;;  %v493_v61 = vadd.f32 %v477_v36, %v423_v15  ;;  %v494_v29 = vadd.f32 %v478_v38, %v424_v20 }
  0xb2   : > { %v609_v7 = vadd.f32 %v595_v3, %v573_v59  ;;  %v610_v8 = vadd.f32 %v595_v3, %v574_v63  ;;  %v611_v12 = vadd.f32 %v595_v3, %v575_v60  ;;  %v612_v40 = vadd.f32 %v595_v3, %v576_v4 }
  0xb4   : > { %v626_v14 = vmul.f32 0.5, %v610_v8  ;;  %v628_v19 = vmul.f32 0.5, %v612_v40  ;;  %v625_v26 = vmul.f32 0.5, %v609_v7  ;;  %v627_v23 = vmul.f32 0.5, %v611_v12 }
  0xb6   : > { %v510_v25 = vpop.permute.xlu1 %509  ;;  %1323 = vtanh.f32 %v626_v14 }
  0xb7   : > { %1325 = vtanh.f32 %v624_v30  ;;  %v545_v32 = vmul.f32 %v1631_v43, %v510_v25  ;;  %v546_v58 = vmul.f32 %v1633_v44, %v510_v25  ;;  %v547_v34 = vmul.f32 %v1637_v48, %v510_v25 }
  0xb8   : > { %1327 = vtanh.f32 %v628_v19  ;;  %v548_v62 = vmul.f32 %v1639_v49, %v510_v25 }
  0xb9   : > { %1329 = vtanh.f32 %v623_v16  ;;  %v561_v43 = vadd.f32 %v545_v32, %v491_v31  ;;  %v562_v50 = vadd.f32 %v546_v58, %v492_v35  ;;  %v563_v48 = vadd.f32 %v547_v34, %v493_v61 }
  0xba   : > { %1331 = vtanh.f32 %v625_v26  ;;  %v564_v54 = vadd.f32 %v548_v62, %v494_v29 }
  0xbb   : > { %v585_v42 = vpop.permute.xlu1 %584  ;;  %1333 = vtanh.f32 %v627_v23 }
  0xbc   : > { %v601_v9 = vadd.f32 %v585_v42, %v565_v27  ;;  %v602_v46 = vadd.f32 %v585_v42, %v566_v37  ;;  %v603_v47 = vadd.f32 %v585_v42, %v567_v28  ;;  %v604_v39 = vadd.f32 %v585_v42, %v568_v41 }
  0xbd   : > { %v1320_v57 = vpop.eup %1319 }
  0xbe   : > { %v617_v44 = vmul.f32 0.5, %v601_v9  ;;  %v618_v51 = vmul.f32 0.5, %v602_v46  ;;  %v619_v52 = vmul.f32 0.5, %v603_v47  ;;  %v620_v53 = vmul.f32 0.5, %v604_v39  ;;  %v1322_v60 = vpop.eup %1321 }
  0xbf   : > { %v580_v10 = vpop.permute.xlu1 %579  ;;  %v654_v12 = vadd.f32 1.0, %v1322_v60  ;;  %v653_v15 = vadd.f32 1.0, %v1320_v57 }
  0xc0   : > { %1335 = vtanh.f32 %v617_v44  ;;  %v597_v55 = vadd.f32 %v580_v10, %v561_v43  ;;  %v598_v56 = vadd.f32 %v580_v10, %v562_v50  ;;  %v599_v49 = vadd.f32 %v580_v10, %v563_v48 }
  0xc1   : > { %1337 = vtanh.f32 %v618_v51  ;;  %v600_v59 = vadd.f32 %v580_v10, %v564_v54  ;;  %v670_v25 = vmul.f32 0.5, %v654_v12  ;;  %v669_v33 = vmul.f32 0.5, %v653_v15  ;;  %v679_v10 = vld [vmem:[%s1783_s5 + $0x10] sm:$0xff]  ;;  %v680_v54 = vld [vmem:[%s1783_s5 + $0x18] sm:$0xff] }
  0xc2   : > { %1339 = vtanh.f32 %v619_v52  ;;  %v613_v63 = vmul.f32 0.5, %v597_v55  ;;  %v614_v0 = vmul.f32 0.5, %v598_v56  ;;  %v615_v1 = vmul.f32 0.5, %v599_v49  ;;  %v677_v52 = vld [vmem:[%s1783_s5] sm:$0xff]  ;;  %v703_v56 = vpop.permute.xlu0 %702 }
  0xc3   : > { %v1324_v2 = vpop.eup %1323  ;;  %1341 = vtanh.f32 %v620_v53  ;;  %v616_v3 = vmul.f32 0.5, %v600_v59  ;;  %v678_v53 = vld [vmem:[%s1783_s5 + $0x8] sm:$0xff]  ;;  %v698_v55 = vpop.permute.xlu1 %697 }
  0xc4   : > { %v1326_v4 = vpop.eup %1325  ;;  %1343 = vtanh.f32 %v613_v63  ;;  %v658_v5 = vadd.f32 1.0, %v1324_v2 }
  0xc5   : > { %v1328_v6 = vpop.eup %1327  ;;  %1345 = vtanh.f32 %v614_v0  ;;  %v656_v14 = vadd.f32 1.0, %v1326_v4 }
  0xc6   : > { %v1330_v7 = vpop.eup %1329  ;;  %1347 = vtanh.f32 %v615_v1  ;;  %v674_v8 = vmul.f32 0.5, %v658_v5  ;;  %v660_v11 = vadd.f32 1.0, %v1328_v6 }
  0xc7   : > { %v1332_v30 = vpop.eup %1331  ;;  %1349 = vtanh.f32 %v616_v3  ;;  %v655_v19 = vadd.f32 1.0, %v1330_v7  ;;  %v672_v26 = vmul.f32 0.5, %v656_v14  ;;  %v688_v49 = vpop.permute.xlu1 %687 }
  0xc8   : > { %v1334_v40 = vpop.eup %1333  ;;  %742 = vmatprep.subr.mxu0 %v674_v8  ;;  %v676_v45 = vmul.f32 0.5, %v660_v11  ;;  %v657_v13 = vadd.f32 1.0, %v1332_v30  ;;  %v693_v3 = vpop.permute.xlu0 %692 }
  0xc9   : > { %v659_v16 = vadd.f32 1.0, %v1334_v40  ;;  %v671_v23 = vmul.f32 0.5, %v655_v19 }
  0xca   : > { %831 = vmatprep.subr.mxu1 %v676_v45  ;;  %v673_v20 = vmul.f32 0.5, %v657_v13 }
  0xcb   : > { %v675_v22 = vmul.f32 0.5, %v659_v16 }
  0xcc   : > { %743 = vmatpush1.msra.mxu0 %v673_v20 }
  0xcd   : > { %v1336_v36 = vpop.eup %1335  ;;  %832 = vmatpush1.msra.mxu1 %v675_v22  ;;  %744 = vmatprep.subr.mxu0 %v670_v25 }
  0xce   : > { %v1338_v27 = vpop.eup %1337  ;;  %833 = vmatprep.subr.mxu1 %v672_v26  ;;  %745 = vmatpush1.msra.mxu0 %v669_v33  ;;  %v649_v37 = vadd.f32 1.0, %v1336_v36 }
  0xcf   : > { %v1340_v28 = vpop.eup %1339  ;;  %834 = vmatpush1.msra.mxu1 %v671_v23  ;;  %v650_v38 = vadd.f32 1.0, %v1338_v27 }
  0xd0   : > { %v1342_v32 = vpop.eup %1341  ;;  %v665_v58 = vmul.f32 0.5, %v649_v37  ;;  %v651_v31 = vadd.f32 1.0, %v1340_v28 }
  0xd1   : > { %v1344_v34 = vpop.eup %1343  ;;  %v666_v41 = vmul.f32 0.5, %v650_v38  ;;  %v652_v35 = vadd.f32 1.0, %v1342_v32 }
  0xd2   : > { %v1346_v61 = vpop.eup %1345  ;;  %v667_v62 = vmul.f32 0.5, %v651_v31  ;;  %v645_v42 = vadd.f32 1.0, %v1344_v34 }
  0xd3   : > { %v1348_v9 = vpop.eup %1347  ;;  %746 = vmatprep.subr.mxu0 %v666_v41  ;;  %v668_v46 = vmul.f32 0.5, %v652_v35  ;;  %v646_v47 = vadd.f32 1.0, %v1346_v61 }
  0xd4   : > { %v1350_v39 = vpop.eup %1349  ;;  %747 = vmatpush1.msra.mxu0 %v665_v58  ;;  %v661_v29 = vmul.f32 0.5, %v645_v42  ;;  %v647_v43 = vadd.f32 1.0, %v1348_v9 }
  0xd5   : > { %835 = vmatprep.subr.mxu1 %v668_v46  ;;  %v662_v50 = vmul.f32 0.5, %v646_v47  ;;  %v648_v44 = vadd.f32 1.0, %v1350_v39 }
  0xd6   : > { %836 = vmatpush1.msra.mxu1 %v667_v62  ;;  %v663_v51 = vmul.f32 0.5, %v647_v43 }
  0xd7   : > { %748 = vmatprep.subr.mxu0 %v662_v50  ;;  %v664_v48 = vmul.f32 0.5, %v648_v44 }
  0xd8   : > { %749 = vmatpush1.msra.mxu0 %v661_v29 }
  0xd9   : > { %837 = vmatprep.subr.mxu1 %v664_v48  ;;  %1247 = vmatmul.mubr.msk.f32.vlgmr.msra.gmra.mxu0 %vm705_vm0, %v677_v52 }
  0xda   : > { %838 = vmatpush1.msra.mxu1 %v663_v51  ;;  %788 = vmatprep.mubr.f32.mxu0 %v1448_v17 }
  0xdb   : > { %1251 = vmatmul.mubr.msk.f32.vlgmr.msra.gmra.mxu1 %vm705_vm0, %v677_v52 }
  0xdc   : > { %877 = vmatprep.mubr.f32.mxu1 %v1448_v17 }
  0xdd   : > { %1248 = vmatmul.mubr.msk.f32.gmra.mxu0 %vm705_vm0, %v678_v53 }
  0xde   : > { %794 = vmatprep.mubr.f32.mxu0 %v1448_v17 }
  0xdf   : > { %1252 = vmatmul.mubr.msk.f32.gmra.mxu1 %vm705_vm0, %v678_v53 }
  0xe0   : > { %883 = vmatprep.mubr.f32.mxu1 %v1448_v17 }
  0xe1   : > { %1249 = vmatmul.mubr.msk.f32.gmra.mxu0 %vm705_vm0, %v679_v10 }
  0xe2   : > { %800 = vmatprep.mubr.f32.mxu0 %v1448_v17 }
  0xe3   : > { %1253 = vmatmul.mubr.msk.f32.gmra.mxu1 %vm705_vm0, %v679_v10 }
  0xe4   : > { %889 = vmatprep.mubr.f32.mxu1 %v1448_v17 }
  0xe5   : > { %1250 = vmatmul.mubr.msk.f32.gmra.mxu0 %vm705_vm0, %v680_v54 }
  0xe6   : > { %1038 = vmatprep.mubr.f32.mxu0 %v1448_v17 }
  0xe7   : > { %1254 = vmatmul.mubr.msk.f32.gmra.mxu1 %vm705_vm0, %v680_v54 }
  0xe8   : > { %1109 = vmatprep.mubr.f32.mxu1 %v1448_v17 }
 0x199   : > { %v784_v57 = vpop.f32.mrf.mxu0 }
 0x19a   : > { %v785_v59 = vadd.f32 %v784_v57, %v688_v49 }
 0x19b   : > { %v873_v60 = vpop.f32.mrf.mxu1  ;;  %v786_v63 = vpop.f32.mrf.mxu0 }
 0x19c   : > { %v787_v0 = vadd.f32 %v786_v63, %v688_v49  ;;  %v896_v4 = vmul.f32 0.5, %v785_v59  ;;  %v874_v41 = vadd.f32 %v873_v60, %v688_v49 }
 0x19d   : > { %v875_v1 = vpop.f32.mrf.mxu1  ;;  %v790_v2 = vpop.f32.mrf.mxu0 }
 0x19e   : > { %v897_v5 = vmul.f32 0.5, %v787_v0  ;;  %v791_v6 = vadd.f32 %v790_v2, %v693_v3  ;;  %1351 = vtanh.f32 %v896_v4  ;;  %v876_v27 = vadd.f32 %v875_v1, %v688_v49 }
 0x19f   : > { %v879_v7 = vpop.f32.mrf.mxu1  ;;  %v792_v8 = vpop.f32.mrf.mxu0  ;;  %v898_v29 = vmul.f32 0.5, %v874_v41 }
 0x1a0   : > { %v793_v11 = vadd.f32 %v792_v8, %v693_v3  ;;  %v900_v30 = vmul.f32 0.5, %v791_v6  ;;  %1353 = vtanh.f32 %v897_v5  ;;  %v880_v37 = vadd.f32 %v879_v7, %v693_v3  ;;  %v965_v41 = vpop.permute.xlu0 %964 }
 0x1a1   : > { %v881_v12 = vpop.f32.mrf.mxu1  ;;  %v796_v17 = vpop.f32.mrf.mxu0  ;;  %v899_v47 = vmul.f32 0.5, %v876_v27 }
 0x1a2   : > { %v901_v40 = vmul.f32 0.5, %v793_v11  ;;  %v882_v45 = vadd.f32 %v881_v12, %v693_v3  ;;  %v797_v13 = vadd.f32 %v796_v17, %v698_v55  ;;  %1355 = vtanh.f32 %v900_v30 }
 0x1a3   : > { %v885_v14 = vpop.f32.mrf.mxu1  ;;  %v798_v15 = vpop.f32.mrf.mxu0  ;;  %v902_v46 = vmul.f32 0.5, %v880_v37 }
 0x1a4   : > { %v903_v16 = vmul.f32 0.5, %v882_v45  ;;  %v886_v19 = vadd.f32 %v885_v14, %v698_v55  ;;  %v799_v20 = vadd.f32 %v798_v15, %v698_v55  ;;  %1357 = vtanh.f32 %v901_v40 }
 0x1a5   : > { %v904_v22 = vmul.f32 0.5, %v797_v13  ;;  %v887_v25 = vpop.f32.mrf.mxu1  ;;  %v802_v26 = vpop.f32.mrf.mxu0 }
 0x1a6   : > { %1359 = vtanh.f32 %v903_v16  ;;  %v906_v33 = vmul.f32 0.5, %v886_v19  ;;  %v905_v36 = vmul.f32 0.5, %v799_v20  ;;  %v888_v23 = vadd.f32 %v887_v25, %v698_v55 }
 0x1a7   : > { %1361 = vtanh.f32 %v904_v22  ;;  %v803_v28 = vadd.f32 %v802_v26, %v703_v56  ;;  %v891_v38 = vpop.f32.mrf.mxu1  ;;  %v804_v32 = vpop.f32.mrf.mxu0 }
 0x1a8   : > { %1363 = vtanh.f32 %v906_v33  ;;  %v907_v58 = vmul.f32 0.5, %v888_v23  ;;  %v892_v31 = vadd.f32 %v891_v38, %v703_v56  ;;  %v805_v34 = vadd.f32 %v804_v32, %v703_v56  ;;  %v960_v32 = vld [vmem:[%s1785_s7] sm:$0x1] }
 0x1a9   : > { %1365 = vtanh.f32 %v905_v36  ;;  %v908_v35 = vmul.f32 0.5, %v803_v28  ;;  %v893_v61 = vpop.f32.mrf.mxu1 }
 0x1aa   : > { %1367 = vtanh.f32 %v907_v58  ;;  %v910_v62 = vmul.f32 0.5, %v892_v31  ;;  %v909_v42 = vmul.f32 0.5, %v805_v34  ;;  %v894_v9 = vadd.f32 %v893_v61, %v703_v56 }
 0x1ab   : > { %1369 = vtanh.f32 %v908_v35  ;;  %v1352_v43 = vpop.eup %1351  ;;  %v1449_v31 = vmov 1966171168  }
 0x1ac   : > { %1371 = vtanh.f32 %v910_v62  ;;  %v911_v39 = vmul.f32 0.5, %v894_v9  ;;  %v928_v16 = vadd.f32 1.0, %v1352_v43  ;;  %v1123_v34 = vunpack.c.l.s4 %v1449_v31 }
 0x1ad   : > { %1373 = vtanh.f32 %v909_v42  ;;  %v1354_v50 = vpop.eup %1353  ;;  %v970_v62 = vrot.slane %v965_v41, %v1601_v24 }
 0x1ae   : > { %1375 = vtanh.f32 %v911_v39  ;;  %v929_v15 = vadd.f32 1.0, %v1354_v50  ;;  %v944_v28 = vmul.f32 0.5, %v928_v16  ;;  %v1124_v35 = vunpack.c.0.s8 %v1123_v34 }
 0x1af   : > { %1377 = vtanh.f32 %v902_v46  ;;  %v1356_v44 = vpop.eup %1355 }
 0x1b0   : > { %1379 = vtanh.f32 %v899_v47  ;;  %v932_v30 = vadd.f32 1.0, %v1356_v44  ;;  %v945_v37 = vmul.f32 0.5, %v929_v15  ;;  %v1127_v39 = vsub.s32 %v1124_v35, %v1592_v21 }
 0x1b1   : > { %1381 = vtanh.f32 %v898_v29  ;;  %v1358_v51 = vpop.eup %1357 }
 0x1b2   : > { %v933_v8 = vadd.f32 1.0, %v1358_v51  ;;  %v948_v36 = vmul.f32 0.5, %v932_v30 }
 0x1b3   : > { %v1360_v52 = vpop.eup %1359 }
 0x1b4   : > { %v1362_v48 = vpop.eup %1361  ;;  %v935_v40 = vadd.f32 1.0, %v1360_v52  ;;  %v949_v33 = vmul.f32 0.5, %v933_v8 }
 0x1b5   : > { %v1364_v53 = vpop.eup %1363  ;;  %v936_v2 = vadd.f32 1.0, %v1362_v48 }
 0x1b6   : > { %v1366_v10 = vpop.eup %1365  ;;  %v938_v6 = vadd.f32 1.0, %v1364_v53  ;;  %v951_v23 = vmul.f32 0.5, %v935_v40 }
 0x1b7   : > { %v1368_v54 = vpop.eup %1367  ;;  %v937_v0 = vadd.f32 1.0, %v1366_v10  ;;  %v952_v19 = vmul.f32 0.5, %v936_v2 }
 0x1b8   : > { %v1370_v55 = vpop.eup %1369  ;;  %v939_v4 = vadd.f32 1.0, %v1368_v54  ;;  %v954_v26 = vmul.f32 0.5, %v938_v6 }
 0x1b9   : > { %v1372_v56 = vpop.eup %1371  ;;  %v940_v57 = vadd.f32 1.0, %v1370_v55  ;;  %v953_v14 = vmul.f32 0.5, %v937_v0 }
 0x1ba   : > { %v1374_v49 = vpop.eup %1373  ;;  %v942_v60 = vadd.f32 1.0, %v1372_v56  ;;  %v955_v20 = vmul.f32 0.5, %v939_v4 }
 0x1bb   : > { %v1376_v59 = vpop.eup %1375  ;;  %v941_v63 = vadd.f32 1.0, %v1374_v49  ;;  %v956_v12 = vmul.f32 0.5, %v940_v57 }
 0x1bc   : > { %v1378_v1 = vpop.eup %1377  ;;  %v943_v3 = vadd.f32 1.0, %v1376_v59  ;;  %v958_v13 = vmul.f32 0.5, %v942_v60 }
 0x1bd   : > { %v1380_v5 = vpop.eup %1379  ;;  %v957_v7 = vmul.f32 0.5, %v941_v63  ;;  %v934_v45 = vadd.f32 1.0, %v1378_v1 }
 0x1be   : > { %v1382_v11 = vpop.eup %1381  ;;  %v959_v17 = vmul.f32 0.5, %v943_v3  ;;  %v931_v22 = vadd.f32 1.0, %v1380_v5 }
 0x1bf   : > { %998 = vmatprep.subr.mxu0 %v957_v7  ;;  %v930_v25 = vadd.f32 1.0, %v1382_v11  ;;  %v950_v27 = vmul.f32 0.5, %v934_v45 }
 0x1c0   : > { %1069 = vmatprep.subr.mxu1 %v959_v17  ;;  %999 = vmatpush1.msra.mxu0 %v956_v12  ;;  %v947_v38 = vmul.f32 0.5, %v931_v22 }
 0x1c1   : > { %1070 = vmatpush1.msra.mxu1 %v958_v13  ;;  %1000 = vmatprep.subr.mxu0 %v953_v14  ;;  %v946_v58 = vmul.f32 0.5, %v930_v25 }
 0x1c2   : > { %1071 = vmatprep.subr.mxu1 %v955_v20  ;;  %1001 = vmatpush1.msra.mxu0 %v952_v19 }
 0x1c3   : > { %1072 = vmatpush1.msra.mxu1 %v954_v26  ;;  %1002 = vmatprep.subr.mxu0 %v949_v33 }
 0x1c4   : > { %1073 = vmatprep.subr.mxu1 %v951_v23  ;;  %1003 = vmatpush1.msra.mxu0 %v948_v36 }
 0x1c5   : > { %1074 = vmatpush1.msra.mxu1 %v950_v27  ;;  %1004 = vmatprep.subr.mxu0 %v945_v37 }
 0x1c6   : > { %1075 = vmatprep.subr.mxu1 %v947_v38  ;;  %1005 = vmatpush1.msra.mxu0 %v944_v28 }
 0x1c7   : > { %1076 = vmatpush1.msra.mxu1 %v946_v58  ;;  %1255 = vmatmul.mubr.msk.f32.vlgmr.msra.gmra.mxu0 %vm705_vm0, %v960_v32 }
 0x1c8   : > { %1256 = vmatmul.mubr.msk.f32.vlgmr.msra.gmra.mxu1 %vm705_vm0, %v960_v32 }
 0x287   : > { %v1040_v61 = vpop.f32.mrf.mxu0 }
 0x288   : > { %v1111_v42 = vpop.f32.mrf.mxu1  ;;  %v1041_v46 = vadd.f32 %v1040_v61, %v970_v62 }
 0x289   : > { %v1042_v9 = vpop.f32.mrf.mxu0  ;;  %v1112_v43 = vadd.f32 %v1111_v42, %v970_v62 }
 0x28a   : > { %v1043_v47 = vadd.f32 %v1042_v9, %v970_v62  ;;  %v1113_v29 = vpop.f32.mrf.mxu1 }
 0x28b   : > { %v1114_v50 = vadd.f32 %v1113_v29, %v970_v62 }
 0x28c   : > { %v1120_v44 = vcombine.low %v1041_v46, %v1043_v47 }
 0x28d   : > { %v1121_v51 = vcombine.low %v1112_v43, %v1114_v50 }
 0x28e   : > { %v1128_v52 = vrot.slane %v1120_v44, %v1127_v39 }
 0x28f   : > { %v1135_v48 = vrot.slane %v1121_v51, %v1127_v39 }
 0x291   : > { %v1136_v53 = vcombine.low %v1128_v52, %v1135_v48 }
 0x293   : > { %v1143_v24 = vrot.slane %v1136_v53, %v1127_v39 }
 0x295   : > { %1149 = vst.msk [vmem:[%s354_s30] sm:$0xf] %vm1147_vm1, %v1143_v24 }
 0x296   : > { %1396 = shalt.err (!%p1393_p3)
}
 0x297   : > { %s1397_s26 = scalar_lea.hbm %s1163_s18, 64  ;;  %s1401_s29 = scalar_lea.hbm %s1787_s9, 128 }
 0x298   : > { %p1398_p4 = scmp.ne.s32.totalorder %s1163_s18, %s1397_s26  ;;  %p1402_p9 = scmp.lt.s32.totalorder %s1163_s18, %s1787_s9 }
 0x299   : > { %p1403_p10 = scmp.lt.s32.totalorder %s1401_s29, %s1397_s26 }
 0x29a   : > { %p1399_p7 = pnand %p1398_p4, %p1542_p5 }
 0x29b   : > { %p1404_p11 = por %p1403_p10, %p1402_p9 }
 0x29c   : > { %p1400_p8 = pneg %p1399_p7 }
 0x29e   : > { %p1405_p12 = pnand %p1404_p11, %p1400_p8 }
 0x2a0   : > { %1408 = shalt.err (!%p1405_p12)
}
 0x2a1   : > { %1263 = dma.vmem_to_hbm [thread:$0]  (%p1542_p5), %s1166_s10, 64, %s1163_s18, %s1151_s22  }
 0x2a2 PF: > { %p1269_p13 = scmp.ge.s32.totalorder %s1443_s14, 2  ;;  %s1177_s17 = sand.u32 1, %s1431_s11  }
 0x2a3   : > { %s1178_s23 = scalar_lea.sflag [#allocation4], %s1177_s17 }
 0x2a4   : > { %p1266_p0 = pnand %p1269_p13, %p1546_p6 }
 0x2a6   : > { %p1267_p1 = pneg %p1266_p0 }
 0x2a8   : > { %1426 = dma.done.wait (%p1267_p1), %s1178_s23, 64  }
 0x2a9   : > { %1428 = vsyncadd (%p1267_p1), %s1178_s23, 4294967232  ;;  %p21_p2 = scmp.ge.s32.totalorder %s1529_s16, 4   ;;  %s1790_s11 = smov %s1435_s12 }
 0x2aa   : > { %s1791_s12 = smov %s1439_s13  ;;  %s1792_s13 = smov %s1540_s19 }
 0x2ab   : > { %s1793_s14 = smov %s1529_s16  ;;  %23 = sbr.rel (!%p21_p2) target bundleno = 6 (0x6), region = 97 }
 0x2b0   :  { %1183 = vsyncpa [#allocation4], 1 }
 0x2b1   :  { %1185 = vsyncpa [#allocation4 + $0x1], 1 }

</bundles_post_ra>
